<compile_context>
chip_gen: v7x
topology: tpu7x:2x2x1
jax: 0.10.0
libtpu: 0.0.40
codegen_flags: <defaults>
</compile_context>

<pallas_src>
import functools

import jax
import jax.numpy as jnp
from jax.experimental import pallas as pl
from jax.experimental.pallas import tpu as pltpu


def _round_up(n: int, m: int) -> int:
    return ((n + m - 1) // m) * m


def _choose_tm(M: int) -> int:
    """Row-tile size: single block for tiny M, else >=4 grid steps, <=512 rows/tile."""
    if M < 64:
        return M                                   # tiny fast path: one full block
    return max(8, min(512, _round_up(pl.cdiv(M, 4), 8)))


def _residual_ff_kernel(x_ref, w1_ref, b1_ref, w2_ref, b2_ref, o_ref, *, approximate):
    # x_ref : (tm, E)         w1_ref: (E, H) mxu dtype   b1_ref: (1, H) f32
    # w2_ref: (H, E) mxu dtype b2_ref: (1, E) f32        o_ref : (tm, E)
    x = x_ref[...].astype(jnp.float32)             # keep f32 for the residual add
    h = jnp.dot(x.astype(w1_ref.dtype), w1_ref[...],
                preferred_element_type=jnp.float32) + b1_ref[...]
    h = jax.nn.gelu(h, approximate=approximate)
    y = jnp.dot(h.astype(w2_ref.dtype), w2_ref[...],
                preferred_element_type=jnp.float32) + b2_ref[...]
    o_ref[...] = (x + y).astype(o_ref.dtype)


def _residual_ff_call(x, w1, b1, w2, b2, approximate):
    B, T, E = x.shape
    H = w1.shape[1]
    M = B * T
    x2d = x.reshape(M, E)                          # layout-preserving, no data movement

    tm = _choose_tm(M)
    grid = pl.cdiv(M, tm)

    # ---- VMEM budget (account for (8,128)-tile padding of small trailing dims) --------
    El, Hl = _round_up(E, 128), _round_up(H, 128)
    tml = _round_up(tm, 8)
    isz_x = jnp.dtype(x.dtype).itemsize
    isz_w = jnp.dtype(w1.dtype).itemsize
    need = (2 * 2 * El * Hl * isz_w                # W1, W2 (default double-buffered)
            + 2 * 8 * (Hl + El) * 4                # biases (padded to 8 sublanes)
            + 2 * 2 * tml * El * isz_x             # x + out tiles, double-buffered
            + tml * Hl * 4 + 2 * tml * El * 4)     # f32 intermediates
    vmem_limit = int(min(max(need + need // 2 + (4 << 20), 8 << 20), 48 << 20))

    cost = pl.CostEstimate(
        flops=4 * M * E * H,                       # two matmuls
        transcendentals=M * H,                     # one GELU per hidden element
        bytes_accessed=2 * M * E * isz_x + 2 * E * H * isz_w + (E + H) * 4,
    )

    kernel = functools.partial(_residual_ff_kernel, approximate=approximate)
    out2d = pl.pallas_call(
        kernel,
        out_shape=jax.ShapeDtypeStruct((M, E), x.dtype),
        grid_spec=pltpu.PrefetchScalarGridSpec(
            num_scalar_prefetch=0,
            grid=(grid,),
            in_specs=[
                pl.BlockSpec((tm, E), lambda i: (i, 0)),   # x tile  (streamed)
                pl.BlockSpec((E, H), lambda i: (0, 0)),    # W1      (grid-invariant)
                pl.BlockSpec((1, H), lambda i: (0, 0)),    # b1      (grid-invariant)
                pl.BlockSpec((H, E), lambda i: (0, 0)),    # W2      (grid-invariant)
                pl.BlockSpec((1, E), lambda i: (0, 0)),    # b2      (grid-invariant)
            ],
            out_specs=pl.BlockSpec((tm, E), lambda i: (i, 0)),
        ),
        compiler_params=pltpu.CompilerParams(
            dimension_semantics=("parallel",),     # row tiles shard across v7x's 2 TCs
            vmem_limit_bytes=vmem_limit,
        ),
        cost_estimate=cost,
    )(x2d, w1, b1, w2, b2)
    return out2d.reshape(B, T, E)


def make_residual_ff(w1, b1, w2, b2, *, mxu_dtype=jnp.bfloat16, approximate_gelu=True):
    """Prepare params once (cast hoisted out of the per-call path); returns jitted f(x)."""
    E, H = w1.shape
    assert w2.shape == (H, E) and b1.shape == (H,) and b2.shape == (E,)
    w1c = jnp.asarray(w1, mxu_dtype)
    w2c = jnp.asarray(w2, mxu_dtype)
    b1c = jnp.asarray(b1, jnp.float32).reshape(1, H)
    b2c = jnp.asarray(b2, jnp.float32).reshape(1, E)

    def apply(x):
        return _residual_ff_call(x, w1c, b1c, w2c, b2c, approximate_gelu)

    return jax.jit(apply)


if __name__ == "__main__":
    # Small shapes consistent with the (B, T, E) contract of the module.
    B, T, E, H = 2, 8, 32, 64

    key = jax.random.PRNGKey(0)
    kx, kw1, kb1, kw2, kb2 = jax.random.split(key, 5)

    x = jax.random.normal(kx, (B, T, E), dtype=jnp.float32)

    # Deterministic parameter init (nn.Linear-style uniform bounds).
    lim1 = 1.0 / jnp.sqrt(E)
    lim2 = 1.0 / jnp.sqrt(H)
    w1 = jax.random.uniform(kw1, (E, H), minval=-lim1, maxval=lim1, dtype=jnp.float32)
    b1 = jax.random.uniform(kb1, (H,),   minval=-lim1, maxval=lim1, dtype=jnp.float32)
    w2 = jax.random.uniform(kw2, (H, E), minval=-lim2, maxval=lim2, dtype=jnp.float32)
    b2 = jax.random.uniform(kb2, (E,),   minval=-lim2, maxval=lim2, dtype=jnp.float32)

    # Pure-JAX f32 reference of x + fn(x).
    ref = x + (jax.nn.gelu(x @ w1 + b1, approximate=True) @ w2 + b2)

    # 1) Default path (bf16 MXU operands, tiny-M single-block fast path).
    ff = make_residual_ff(w1, b1, w2, b2)
    out = jax.block_until_ready(ff(x))
    assert out.shape == (B, T, E)
    assert jnp.allclose(out, ref, atol=2e-2, rtol=2e-2), \
        float(jnp.max(jnp.abs(out - ref)))

    # 2) Full-f32 compute path: tight tolerance, verifies the fused structure exactly.
    ff32 = make_residual_ff(w1, b1, w2, b2, mxu_dtype=jnp.float32)
    out32 = jax.block_until_ready(ff32(x))
    assert jnp.allclose(out32, ref, atol=1e-4, rtol=1e-4), \
        float(jnp.max(jnp.abs(out32 - ref)))

    # 3) Multi-tile path with a ragged last block (M = 790 -> tm = 200, grid = 4).
    x_big = jax.random.normal(jax.random.PRNGKey(1), (5, 158, E), dtype=jnp.float32)
    ref_big = x_big + (jax.nn.gelu(x_big @ w1 + b1, approximate=True) @ w2 + b2)
    out_big = jax.block_until_ready(ff(x_big))
    assert out_big.shape == x_big.shape
    assert jnp.allclose(out_big, ref_big, atol=2e-2, rtol=2e-2), \
        float(jnp.max(jnp.abs(out_big - ref_big)))

    print("KERNEL_OK")
</pallas_src>

<mosaic_0001>
module attributes {stable_mosaic.version = 11 : i64} {
  func.func @_residual_ff_kernel(%arg0: i32, %arg1: memref<16x32xf32, #tpu.memory_space<vmem>>, %arg2: memref<32x64xbf16, #tpu.memory_space<vmem>>, %arg3: memref<1x64xf32, #tpu.memory_space<vmem>>, %arg4: memref<64x32xbf16, #tpu.memory_space<vmem>>, %arg5: memref<1x32xf32, #tpu.memory_space<vmem>>, %arg6: memref<16x32xf32, #tpu.memory_space<vmem>>) attributes {dimension_semantics = [#tpu.dimension_semantics<parallel>], iteration_bounds = array<i64: 1>, scalar_prefetch = 0 : i64, scratch_operands = 0 : i64, tpu.core_type = #tpu.core_type<tc>, window_params = [{transform_indices = @transform_0, window_bounds = array<i64: 16, 32>}, {pipeline_mode = #tpu.pipeline_mode<synchronous>, transform_indices = @transform_1, window_bounds = array<i64: 32, 64>}, {pipeline_mode = #tpu.pipeline_mode<synchronous>, transform_indices = @transform_2, window_bounds = array<i64: 1, 64>}, {pipeline_mode = #tpu.pipeline_mode<synchronous>, transform_indices = @transform_3, window_bounds = array<i64: 64, 32>}, {pipeline_mode = #tpu.pipeline_mode<synchronous>, transform_indices = @transform_4, window_bounds = array<i64: 1, 32>}, {transform_indices = @transform_5, window_bounds = array<i64: 16, 32>}]} {
    %c0 = arith.constant 0 : index
    %c0_0 = arith.constant 0 : index
    %0 = vector.load %arg1[%c0, %c0_0] : memref<16x32xf32, #tpu.memory_space<vmem>>, vector<16x32xf32>
    %1 = arith.truncf %0 : vector<16x32xf32> to vector<16x32xbf16>
    %c0_1 = arith.constant 0 : index
    %c0_2 = arith.constant 0 : index
    %2 = vector.load %arg2[%c0_1, %c0_2] : memref<32x64xbf16, #tpu.memory_space<vmem>>, vector<32x64xbf16>
    %cst = arith.constant dense<0.000000e+00> : vector<16x64xf32>
    %3 = tpu.matmul %1, %2, %cst {dimension_numbers = #tpu.dot_dimension_numbers<[1], [0], [0], [1], [0, 0, 1, 1], [], []>} : vector<16x32xbf16>, vector<32x64xbf16>, vector<16x64xf32> -> vector<16x64xf32>
    %c0_3 = arith.constant 0 : index
    %c0_4 = arith.constant 0 : index
    %4 = vector.load %arg3[%c0_3, %c0_4] : memref<1x64xf32, #tpu.memory_space<vmem>>, vector<1x64xf32>
    %5 = vector.broadcast %4 : vector<1x64xf32> to vector<16x64xf32>
    %6 = arith.addf %3, %5 : vector<16x64xf32>
    %7 = arith.mulf %6, %6 : vector<16x64xf32>
    %8 = arith.mulf %6, %7 : vector<16x64xf32>
    %cst_5 = arith.constant 4.471500e-02 : f32
    %9 = vector.broadcast %cst_5 : f32 to vector<16x64xf32>
    %10 = arith.mulf %9, %8 : vector<16x64xf32>
    %11 = arith.addf %6, %10 : vector<16x64xf32>
    %cst_6 = arith.constant 0.797884583 : f32
    %12 = vector.broadcast %cst_6 : f32 to vector<16x64xf32>
    %13 = arith.mulf %12, %11 : vector<16x64xf32>
    %14 = math.tanh %13 : vector<16x64xf32>
    %cst_7 = arith.constant 1.000000e+00 : f32
    %15 = vector.broadcast %cst_7 : f32 to vector<16x64xf32>
    %16 = arith.addf %15, %14 : vector<16x64xf32>
    %cst_8 = arith.constant 5.000000e-01 : f32
    %17 = vector.broadcast %cst_8 : f32 to vector<16x64xf32>
    %18 = arith.mulf %17, %16 : vector<16x64xf32>
    %19 = arith.mulf %6, %18 : vector<16x64xf32>
    %20 = arith.truncf %19 : vector<16x64xf32> to vector<16x64xbf16>
    %c0_9 = arith.constant 0 : index
    %c0_10 = arith.constant 0 : index
    %21 = vector.load %arg4[%c0_9, %c0_10] : memref<64x32xbf16, #tpu.memory_space<vmem>>, vector<64x32xbf16>
    %cst_11 = arith.constant dense<0.000000e+00> : vector<16x32xf32>
    %22 = tpu.matmul %20, %21, %cst_11 {dimension_numbers = #tpu.dot_dimension_numbers<[1], [0], [0], [1], [0, 0, 1, 1], [], []>} : vector<16x64xbf16>, vector<64x32xbf16>, vector<16x32xf32> -> vector<16x32xf32>
    %c0_12 = arith.constant 0 : index
    %c0_13 = arith.constant 0 : index
    %23 = vector.load %arg5[%c0_12, %c0_13] : memref<1x32xf32, #tpu.memory_space<vmem>>, vector<1x32xf32>
    %24 = vector.broadcast %23 : vector<1x32xf32> to vector<16x32xf32>
    %25 = arith.addf %22, %24 : vector<16x32xf32>
    %26 = arith.addf %0, %25 : vector<16x32xf32>
    %c0_14 = arith.constant 0 : index
    %c0_15 = arith.constant 0 : index
    %27 = vector.load %arg6[%c0_14, %c0_15] : memref<16x32xf32, #tpu.memory_space<vmem>>, vector<16x32xf32>
    tpu.vector_store %arg6[%c0_14, %c0_15], %26 {strides = array<i32>} : memref<16x32xf32, #tpu.memory_space<vmem>>, vector<16x32xf32>,
    return
  }
  func.func @transform_0(%arg0: i32) -> (i32, i32) {
    %c0_i32 = arith.constant 0 : i32
    %c0_i32_0 = arith.constant 0 : i32
    return %arg0, %c0_i32 : i32, i32
  }
  func.func @transform_1(%arg0: i32) -> (i32, i32) {
    %c0_i32 = arith.constant 0 : i32
    %c0_i32_0 = arith.constant 0 : i32
    %c0_i32_1 = arith.constant 0 : i32
    return %c0_i32, %c0_i32_0 : i32, i32
  }
  func.func @transform_2(%arg0: i32) -> (i32, i32) {
    %c0_i32 = arith.constant 0 : i32
    %c0_i32_0 = arith.constant 0 : i32
    %c0_i32_1 = arith.constant 0 : i32
    return %c0_i32, %c0_i32_0 : i32, i32
  }
  func.func @transform_3(%arg0: i32) -> (i32, i32) {
    %c0_i32 = arith.constant 0 : i32
    %c0_i32_0 = arith.constant 0 : i32
    %c0_i32_1 = arith.constant 0 : i32
    return %c0_i32, %c0_i32_0 : i32, i32
  }
  func.func @transform_4(%arg0: i32) -> (i32, i32) {
    %c0_i32 = arith.constant 0 : i32
    %c0_i32_0 = arith.constant 0 : i32
    %c0_i32_1 = arith.constant 0 : i32
    return %c0_i32, %c0_i32_0 : i32, i32
  }
  func.func @transform_5(%arg0: i32) -> (i32, i32) {
    %c0_i32 = arith.constant 0 : i32
    %c0_i32_0 = arith.constant 0 : i32
    return %arg0, %c0_i32 : i32, i32
  }
}

</mosaic_0001>

<bundles_post_ra>
// kernel: apply.1
= control target key start
LH: loop header
LB: loop body
LE: loop exit
PB: predicated region body
PF: predicated region fallthrough
CT: control target
= control target key end

     0   :  { %10 = vsyncpa [#allocation3], 0  ;;  %s471_s0 = inlined_call_operand.hbm [shape: f32[16,32], index: 0, kind: input, shape index: {}]   ;;  %s472_s1 = inlined_call_operand.vmem [shape: bf16[32,64], index: 1, kind: input, shape index: {}]   ;;  %s473_s2 = inlined_call_operand.vmem [shape: f32[1,64], index: 2, kind: input, shape index: {}]   ;;  %s474_s3 = inlined_call_operand.hbm [shape: bf16[64,32], index: 3, kind: input, shape index: {}]   ;;  %s475_s4 = inlined_call_operand.vmem [shape: f32[1,32], index: 4, kind: input, shape index: {}]   ;;  %s476_s5 = inlined_call_operand.hbm [shape: f32[16,32], index: 5, kind: output, shape index: {}]  }
   0x1   :  { %11 = vsyncpa [#allocation6], 0 }
   0x2   :  { %12 = vsyncpa [#allocation4], 0  ;;  %s375_s18 = smov [#allocation2]   ;;  %s303_s22 = scalar_lea.hbm %s471_s0, 256 }
   0x3   :  { %s18_s19 = sshll.u32 %s375_s18, 4  ;;  %p304_p0 = scmp.ne.s32.totalorder %s471_s0, %s303_s22  ;;  %s19_s19 = int_to_ptr.vmem [resolvable:$true] %s18_s19 }
   0x4   :  { %p307_p1 = scmp.lt.u32.totalorder %s303_s22, %s471_s0 }
   0x6   :  { %p309_p2 = pnand %p307_p1, %p304_p0 }
   0x8   :  { %312 = shalt.err (!%p309_p2)
}
   0x9   :  { %s313_s27 = scalar_lea.vmem %s19_s19, 256  ;;  %p318_p4 = scmp.lt.s32.totalorder %s19_s19, %s19_s19 }
   0xa   :  { %p314_p3 = scmp.ne.s32.totalorder %s19_s19, %s313_s27  ;;  %p319_p5 = scmp.lt.s32.totalorder %s313_s27, %s313_s27 }
   0xc   :  { %p320_p6 = por %p319_p5, %p318_p4 }
   0xe   :  { %p321_p7 = pnand %p320_p6, %p314_p3 }
  0x10   :  { %324 = shalt.err (!%p321_p7)
}
  0x11   :  { %s376_s28 = smov 128   ;;  %s377_s29 = smov 8  }
  0x12   :  { %24 = dma.hbm_to_vmem [thread:$0]  %s471_s0, 256, %s19_s19, [#allocation3], %s376_s28, %s376_s28, %s377_s29  }
  0x13   :  { %s378_s7 = smov [#allocation5]   ;;  %s325_s11 = scalar_lea.hbm %s474_s3, 512 }
  0x14   :  { %s34_s8 = sshll.u32 %s378_s7, 4  ;;  %p326_p8 = scmp.ne.s32.totalorder %s474_s3, %s325_s11  ;;  %s35_s8 = int_to_ptr.vmem [resolvable:$true] %s34_s8 }
  0x15   :  { %p329_p9 = scmp.lt.u32.totalorder %s325_s11, %s474_s3 }
  0x17   :  { %p331_p10 = pnand %p329_p9, %p326_p8 }
  0x19   :  { %334 = shalt.err (!%p331_p10)
}
  0x1a   :  { %s335_s16 = scalar_lea.vmem %s35_s8, 512  ;;  %p340_p12 = scmp.lt.s32.totalorder %s35_s8, %s35_s8 }
  0x1b   :  { %p336_p11 = scmp.ne.s32.totalorder %s35_s8, %s335_s16  ;;  %p341_p13 = scmp.lt.s32.totalorder %s335_s16, %s335_s16 }
  0x1d   :  { %p342_p0 = por %p341_p13, %p340_p12 }
  0x1f   :  { %p343_p1 = pnand %p342_p0, %p336_p11 }
  0x21   :  { %346 = shalt.err (!%p343_p1)
}
  0x22   :  { %s379_s0 = smov 64   ;;  %s380_s17 = smov 4  }
  0x23   :  { %40 = dma.hbm_to_vmem [thread:$0]  %s474_s3, 512, %s35_s8, [#allocation6], %s379_s0, %s379_s0, %s380_s17  }
  0x24   :  { %369 = dma.done.wait [#allocation3], 256  }
  0x25   :  { %370 = vsyncadd [#allocation3], 4294967040 }
  0x26   :  { %371 = dma.done.wait [#allocation6], 512  }
  0x27   :  { %372 = vsyncadd [#allocation6], 4294966784  ;;  %v381_v0 = vmov 0.0   ;;  %vm382_vm0 = vmmov 0   ;;  %v293_v1 = vld [vmem:[%s472_s1] sm:$0xff]   ;;  %v294_v2 = vld [vmem:[%s472_s1 + $0x8] sm:$0xff]  }
  0x28   :  { %264 = vmatprep.subr.bf16.mxu0 %v381_v0  ;;  %268 = vmatprep.mubr.msk.bf16.mxu0 %vm382_vm0, %v381_v0  ;;  %v50_v3 = vld [vmem:[#allocation2] sm:$0xff]  ;;  %v51_v4 = vld [vmem:[#allocation2 + $0x8] sm:$0xff]  ;;  %vm76_vm1 = vcmask 261120   ;;  %v295_v6 = vld [vmem:[#allocation5] sm:$0xff]   ;;  %vm179_vm2 = vcmask 523264   ;;  %s383_s25 = smov [#allocation7]  }
  0x29   :  { %272 = vmatprep.subr.bf16.mxu1 %v381_v0  ;;  %280 = vmatprep.mubr.msk.bf16.mxu1 %vm382_vm0, %v381_v0  ;;  %v52_v5 = vpack.c.bf16 %v51_v4, %v50_v3  ;;  %v296_v7 = vld [vmem:[#allocation5 + $0x8] sm:$0xff]   ;;  %v297_v8 = vld [vmem:[#allocation5 + $0x10] sm:$0xff]   ;;  %v298_v9 = vld [vmem:[#allocation5 + $0x18] sm:$0xff]   ;;  %s233_s26 = sshll.u32 %s383_s25, 4  ;;  %s234_s26 = int_to_ptr.vmem [resolvable:$true] %s233_s26 }
  0x2a   :  { %265 = vmatpush3.bf16.msra.mxu0 %v293_v1  ;;  %273 = vmatpush3.bf16.msra.mxu1 %v295_v6  ;;  %v246_v10 = vld [vmem:[%s473_s2] ss:$0 sm:$0xff]  ;;  %s347_s27 = scalar_lea.vmem %s234_s26, 256  ;;  %p352_p3 = scmp.lt.s32.totalorder %s234_s26, %s234_s26 }
  0x2b   :  { %266 = vmatprep.subr.bf16.mxu0 %v381_v0  ;;  %274 = vmatprep.subr.bf16.mxu1 %v381_v0  ;;  %v250_v36 = vld [vmem:[%s475_s4] ss:$0 sm:$0xff]  ;;  %p348_p2 = scmp.ne.s32.totalorder %s234_s26, %s347_s27  ;;  %p353_p4 = scmp.lt.s32.totalorder %s347_s27, %s347_s27 }
  0x2d   :  { %p354_p5 = por %p353_p4, %p352_p3 }
  0x2e   :  { %267 = vmatpush3.bf16.msra.mxu0 %v294_v2  ;;  %275 = vmatpush3.bf16.msra.mxu1 %v296_v7 }
  0x2f   :  { %276 = vmatprep.subr.bf16.mxu1 %v381_v0  ;;  %p355_p6 = pnand %p354_p5, %p348_p2 }
  0x31   :  { %269 = vmatmul.mubr.msk.bf16.vlgmr.msra.gmra.mrb[0].mxu0 %vm76_vm1, %v52_v5 }
  0x32   :  { %277 = vmatpush3.bf16.msra.mxu1 %v297_v8 }
  0x33   :  { %278 = vmatprep.subr.bf16.mxu1 %v381_v0 }
  0x36   :  { %279 = vmatpush3.bf16.msra.mxu1 %v298_v9 }
 0x104   :  { %v114_v11 = vpop.f32.mrb[0].mxu0 }
 0x105   :  { %v115_v12 = vadd.f32 %v246_v10, %v114_v11  ;;  %v270_v13 = vpop.f32.mrb[1].mxu0 }
 0x106   :  { %v117_v14 = vpop.f32.mrb[2].mxu0 }
 0x107   :  { %v121_v15 = vmul.f32 %v115_v12, %v115_v12  ;;  %v118_v16 = vadd.f32 %v246_v10, %v117_v14  ;;  %v271_v17 = vpop.f32.mrb[3].mxu0 }
 0x109   :  { %v123_v18 = vmul.f32 %v121_v15, %v115_v12  ;;  %v122_v19 = vmul.f32 %v118_v16, %v118_v16 }
 0x10b   :  { %v125_v20 = vmul.f32 0.044715, %v123_v18  ;;  %v124_v21 = vmul.f32 %v122_v19, %v118_v16 }
 0x10d   :  { %v127_v22 = vadd.f32 %v125_v20, %v115_v12  ;;  %v126_v23 = vmul.f32 0.044715, %v124_v21 }
 0x10f   :  { %v129_v24 = vmul.f32 0.7978846, %v127_v22  ;;  %v128_v25 = vadd.f32 %v126_v23, %v118_v16 }
 0x111   :  { %299 = vtanh.f32 %v129_v24  ;;  %v130_v26 = vmul.f32 0.7978846, %v128_v25 }
 0x113   :  { %301 = vtanh.f32 %v130_v26 }
 0x11b   :  { %v300_v27 = vpop.eup %299 }
 0x11c   :  { %v133_v28 = vadd.f32 1.0, %v300_v27 }
 0x11d   :  { %v302_v29 = vpop.eup %301 }
 0x11e   :  { %v135_v30 = vmul.f32 0.5, %v133_v28  ;;  %v134_v31 = vadd.f32 1.0, %v302_v29 }
 0x120   :  { %v136_v32 = vmul.f32 0.5, %v134_v31  ;;  %v137_v33 = vmul.f32 %v135_v30, %v115_v12 }
 0x122   :  { %v138_v34 = vmul.f32 %v136_v32, %v118_v16 }
 0x124   :  { %v139_v35 = vpack.c.bf16 %v138_v34, %v137_v33 }
 0x126   :  { %281 = vmatmul.mubr.msk.bf16.vlgmr.msra.gmra.mrb[0].mxu1 %vm179_vm2, %v139_v35 }
 0x1f9   :  { %v217_v37 = vpop.f32.mrb[0].mxu1 }
 0x1fa   :  { %v218_v38 = vadd.f32 %v250_v36, %v217_v37  ;;  %v282_v39 = vpop.f32.mrb[1].mxu1 }
 0x1fb   :  { %v220_v40 = vpop.f32.mrb[2].mxu1 }
 0x1fc   :  { %v224_v41 = vadd.f32 %v218_v38, %v50_v3  ;;  %v221_v42 = vadd.f32 %v250_v36, %v220_v40  ;;  %v283_v43 = vpop.f32.mrb[3].mxu1 }
 0x1fe   :  { %226 = vst.msk [vmem:[#allocation7] sm:$0xff] %vm76_vm1, %v224_v41  ;;  %v225_v44 = vadd.f32 %v221_v42, %v51_v4 }
 0x200   :  { %227 = vst.msk [vmem:[#allocation7 + $0x8] sm:$0xff] %vm76_vm1, %v225_v44 }
 0x201   :  { %358 = shalt.err (!%p355_p6)
}
 0x202   :  { %s359_s6 = scalar_lea.hbm %s476_s5, 256 }
 0x203   :  { %p360_p7 = scmp.ne.s32.totalorder %s476_s5, %s359_s6  ;;  %p363_p8 = scmp.lt.u32.totalorder %s359_s6, %s476_s5 }
 0x205   :  { %p365_p9 = pnand %p363_p8, %p360_p7 }
 0x207   :  { %368 = shalt.err (!%p365_p9)
}
 0x208   :  { %239 = dma.vmem_to_hbm [thread:$0]  %s234_s26, 256, %s476_s5, [#allocation4], %s376_s28, %s376_s28, %s377_s29  }
 0x209   :  { %373 = dma.done.wait [#allocation4], 256  }
 0x20a   :  { %374 = vsyncadd [#allocation4], 4294967040 }
 0x20b   :  { %243 = vsyncpa [#allocation3], 1 }
 0x20c   :  { %244 = vsyncpa [#allocation6], 1 }
 0x20d   :  { %245 = vsyncpa [#allocation4], 1 }

</bundles_post_ra>
